<compile_context>
chip_gen: v5e
topology: v5e:2x2
jax: 0.10.0
libtpu: 0.0.40
codegen_flags: <defaults>
</compile_context>

<pallas_src>
import functools

import jax
import jax.numpy as jnp
from jax.experimental import pallas as pl
from jax.experimental.pallas import tpu as pltpu


def _round_up(x, m):
    return (x + m - 1) // m * m


def _cdiv(a, b):
    return -(-a // b)


# ----------------------------------------------------------------------------
# Deterministic orthogonal init (mirror of torch.nn.init.orthogonal_)
# ----------------------------------------------------------------------------
def orthogonal_init(key, out_features, in_features, gain=1.0, dtype=jnp.float32):
    """Returns weight of shape (in_features, out_features) (transposed w.r.t.
    the PyTorch (out, in) convention) and a zero bias of shape (1, out)."""
    rows, cols = out_features, in_features
    transpose = rows < cols
    shape = (cols, rows) if transpose else (rows, cols)
    a = jax.random.normal(key, shape, dtype=jnp.float32)
    q, r = jnp.linalg.qr(a)
    d = jnp.sign(jnp.diag(r))
    q = q * d[None, :]
    if transpose:
        q = q.T                       # (out_features, in_features)
    w_torch_layout = gain * q         # (out_features, in_features)
    w = jnp.asarray(w_torch_layout.T, dtype=dtype)   # (in, out) for x @ W
    b = jnp.zeros((1, out_features), dtype=dtype)
    return w, b


def init_critic_params(key, input_dim, output_dim, mid_dim=128, lane_multiple=8):
    """Builds critic params; pads w3/b3 columns ONCE here (hoisted out of the
    per-call forward path).  Padded columns are zero, so the extra output
    lanes are exact zeros and are sliced off by the wrapper."""
    k1, k2, k3 = jax.random.split(key, 3)
    w1, b1 = orthogonal_init(k1, mid_dim, input_dim)
    w2, b2 = orthogonal_init(k2, mid_dim, mid_dim)
    w3, b3 = orthogonal_init(k3, output_dim, mid_dim)
    d_out_p = _round_up(output_dim, lane_multiple)
    w3p = jnp.pad(w3, ((0, 0), (0, d_out_p - output_dim)))
    b3p = jnp.pad(b3, ((0, 0), (0, d_out_p - output_dim)))
    return {
        "w1": w1, "b1": b1, "w2": w2, "b2": b2,
        "w3": w3, "b3": b3,          # unpadded (reference / export)
        "w3p": w3p, "b3p": b3p,      # pre-padded for the Pallas forward
    }


# ----------------------------------------------------------------------------
# Pallas kernel: fused 3-layer MLP with tanh activations
# ----------------------------------------------------------------------------
def critic_kernel(x_ref, w1_ref, b1_ref, w2_ref, b2_ref, w3_ref, b3_ref, o_ref):
    x = x_ref[...]
    h1 = jnp.tanh(
        jnp.dot(x, w1_ref[...], preferred_element_type=jnp.float32) + b1_ref[...]
    )
    h2 = jnp.tanh(
        jnp.dot(h1, w2_ref[...], preferred_element_type=jnp.float32) + b2_ref[...]
    )
    y = jnp.dot(h2, w3_ref[...], preferred_element_type=jnp.float32) + b3_ref[...]
    o_ref[...] = y.astype(o_ref.dtype)


@functools.partial(jax.jit, static_argnames=("d_out", "batch_tile"))
def critic_forward(x, params, *, d_out, batch_tile=1024):
    """x: (B, input_dim) float32.  params: dict with w1,b1,w2,b2,w3p,b3p
    (w3p/b3p pre-padded to a multiple of 8 output lanes)."""
    w1, b1 = params["w1"], params["b1"]
    w2, b2 = params["w2"], params["b2"]
    w3p, b3p = params["w3p"], params["b3p"]

    B, d_in = x.shape
    mid = w1.shape[1]
    d_out_p = w3p.shape[1]

    # ---- batch tiling ------------------------------------------------------
    # Pick the number of grid steps first, then size the tile, so the wrapper
    # pad is only a few rows instead of up to a whole tile:
    #   * large batches: ~batch_tile rows/step (mem-bound roofline 85%+).
    #   * mid batches:   at least 2 steps so both v7x TensorCores get work.
    #   * tiny batches:  single step, tile rounded to the 8-row sublane.
    num_steps = _cdiv(B, batch_tile)
    if B >= 16:
        num_steps = max(num_steps, 2)
    tile = _round_up(_cdiv(B, num_steps), 8)
    B_p = _round_up(B, tile)
    if B_p != B:
        x = jnp.pad(x, ((0, B_p - B), (0, 0)))
    grid = (B_p // tile,)

    # Batch axis is tiled; weights/biases are replicated (same block each step).
    in_specs = [
        pl.BlockSpec((tile, d_in), lambda i: (i, 0)),      # x
        pl.BlockSpec((d_in, mid), lambda i: (0, 0)),       # w1
        pl.BlockSpec((1, mid), lambda i: (0, 0)),          # b1
        pl.BlockSpec((mid, mid), lambda i: (0, 0)),        # w2
        pl.BlockSpec((1, mid), lambda i: (0, 0)),          # b2
        pl.BlockSpec((mid, d_out_p), lambda i: (0, 0)),    # w3 (8-lane pad)
        pl.BlockSpec((1, d_out_p), lambda i: (0, 0)),      # b3 (8-lane pad)
    ]
    # Narrow (8-lane) output: last dim equals the full array dim, so the
    # (8,128) block constraint is satisfied and HBM write traffic stays small.
    out_spec = pl.BlockSpec((tile, d_out_p), lambda i: (i, 0))

    flops = 2 * B_p * (d_in * mid + mid * mid + mid * d_out_p)
    transcendentals = 2 * B_p * mid
    bytes_accessed = 4 * (
        B_p * d_in                              # x
        + d_in * mid + mid + mid * mid + mid    # w1,b1,w2,b2
        + mid * d_out_p + d_out_p               # w3,b3
        + B_p * d_out_p                         # out (narrow layout)
    )

    y_p = pl.pallas_call(
        critic_kernel,
        out_shape=jax.ShapeDtypeStruct((B_p, d_out_p), x.dtype),
        grid_spec=pltpu.PrefetchScalarGridSpec(
            num_scalar_prefetch=0,
            grid=grid,
            in_specs=in_specs,
            out_specs=out_spec,
        ),
        compiler_params=pltpu.CompilerParams(
            dimension_semantics=("parallel",),
        ),
        cost_estimate=pl.CostEstimate(
            flops=flops,
            transcendentals=transcendentals,
            bytes_accessed=bytes_accessed,
        ),
    )(x, w1, b1, w2, b2, w3p, b3p)

    return y_p[:B, :d_out]


# ----------------------------------------------------------------------------
# Pure-JAX reference (same math as the PyTorch module)
# ----------------------------------------------------------------------------
def critic_reference(x, params):
    h1 = jnp.tanh(x @ params["w1"] + params["b1"])
    h2 = jnp.tanh(h1 @ params["w2"] + params["b2"])
    return h2 @ params["w3"] + params["b3"]


if __name__ == "__main__":
    # Shapes consistent with critic(input_dim, output_dim, mid_dim=128).
    input_dim = 32
    mid_dim = 128
    output_dim = 4

    key = jax.random.PRNGKey(0)
    kx1, kx2, kp = jax.random.split(key, 3)

    params = init_critic_params(kp, input_dim, output_dim, mid_dim)
    fwd_params = {k: params[k] for k in ("w1", "b1", "w2", "b2", "w3p", "b3p")}

    # Small inference-style batch (single grid step path, no padding).
    x_small = jax.random.normal(kx1, (8, input_dim), dtype=jnp.float32)
    y_small = jax.block_until_ready(
        critic_forward(x_small, fwd_params, d_out=output_dim)
    )
    y_small_ref = critic_reference(x_small, params)
    assert y_small.shape == (8, output_dim)
    assert jnp.allclose(y_small, y_small_ref, atol=1e-5, rtol=1e-5), \
        "Pallas output mismatch (small batch)"

    # Ragged mid-sized batch (2-step parallel grid, 4-row batch pad,
    # 8-lane narrow output store).
    x_big = jax.random.normal(kx2, (300, input_dim), dtype=jnp.float32)
    y_big = jax.block_until_ready(
        critic_forward(x_big, fwd_params, d_out=output_dim)
    )
    y_big_ref = critic_reference(x_big, params)
    assert y_big.shape == (300, output_dim)
    assert jnp.allclose(y_big, y_big_ref, atol=1e-5, rtol=1e-5), \
        "Pallas output mismatch (tiled batch)"

    print("KERNEL_OK")
</pallas_src>

<mosaic_0001>
module attributes {stable_mosaic.version = 11 : i64} {
  func.func @critic_kernel(%arg0: i32, %arg1: memref<8x32xf32, #tpu.memory_space<vmem>>, %arg2: memref<32x128xf32, #tpu.memory_space<vmem>>, %arg3: memref<1x128xf32, #tpu.memory_space<vmem>>, %arg4: memref<128x128xf32, #tpu.memory_space<vmem>>, %arg5: memref<1x128xf32, #tpu.memory_space<vmem>>, %arg6: memref<128x8xf32, #tpu.memory_space<vmem>>, %arg7: memref<1x8xf32, #tpu.memory_space<vmem>>, %arg8: memref<8x8xf32, #tpu.memory_space<vmem>>) attributes {dimension_semantics = [#tpu.dimension_semantics<parallel>], iteration_bounds = array<i64: 1>, scalar_prefetch = 0 : i64, scratch_operands = 0 : i64, tpu.core_type = #tpu.core_type<tc>, window_params = [{transform_indices = @transform_0, window_bounds = array<i64: 8, 32>}, {pipeline_mode = #tpu.pipeline_mode<synchronous>, transform_indices = @transform_1, window_bounds = array<i64: 32, 128>}, {pipeline_mode = #tpu.pipeline_mode<synchronous>, transform_indices = @transform_2, window_bounds = array<i64: 1, 128>}, {pipeline_mode = #tpu.pipeline_mode<synchronous>, transform_indices = @transform_3, window_bounds = array<i64: 128, 128>}, {pipeline_mode = #tpu.pipeline_mode<synchronous>, transform_indices = @transform_4, window_bounds = array<i64: 1, 128>}, {pipeline_mode = #tpu.pipeline_mode<synchronous>, transform_indices = @transform_5, window_bounds = array<i64: 128, 8>}, {pipeline_mode = #tpu.pipeline_mode<synchronous>, transform_indices = @transform_6, window_bounds = array<i64: 1, 8>}, {transform_indices = @transform_7, window_bounds = array<i64: 8, 8>}]} {
    %c0 = arith.constant 0 : index
    %c0_0 = arith.constant 0 : index
    %0 = vector.load %arg1[%c0, %c0_0] : memref<8x32xf32, #tpu.memory_space<vmem>>, vector<8x32xf32>
    %c0_1 = arith.constant 0 : index
    %c0_2 = arith.constant 0 : index
    %1 = vector.load %arg2[%c0_1, %c0_2] : memref<32x128xf32, #tpu.memory_space<vmem>>, vector<32x128xf32>
    %cst = arith.constant dense<0.000000e+00> : vector<8x128xf32>
    %2 = tpu.matmul %0, %1, %cst {dimension_numbers = #tpu.dot_dimension_numbers<[1], [0], [0], [1], [0, 0, 1, 1], [], []>} : vector<8x32xf32>, vector<32x128xf32>, vector<8x128xf32> -> vector<8x128xf32>
    %c0_3 = arith.constant 0 : index
    %c0_4 = arith.constant 0 : index
    %3 = vector.load %arg3[%c0_3, %c0_4] : memref<1x128xf32, #tpu.memory_space<vmem>>, vector<1x128xf32>
    %4 = vector.broadcast %3 : vector<1x128xf32> to vector<8x128xf32>
    %5 = arith.addf %2, %4 : vector<8x128xf32>
    %6 = math.tanh %5 : vector<8x128xf32>
    %c0_5 = arith.constant 0 : index
    %c0_6 = arith.constant 0 : index
    %7 = vector.load %arg4[%c0_5, %c0_6] : memref<128x128xf32, #tpu.memory_space<vmem>>, vector<128x128xf32>
    %cst_7 = arith.constant dense<0.000000e+00> : vector<8x128xf32>
    %8 = tpu.matmul %6, %7, %cst_7 {dimension_numbers = #tpu.dot_dimension_numbers<[1], [0], [0], [1], [0, 0, 1, 1], [], []>} : vector<8x128xf32>, vector<128x128xf32>, vector<8x128xf32> -> vector<8x128xf32>
    %c0_8 = arith.constant 0 : index
    %c0_9 = arith.constant 0 : index
    %9 = vector.load %arg5[%c0_8, %c0_9] : memref<1x128xf32, #tpu.memory_space<vmem>>, vector<1x128xf32>
    %10 = vector.broadcast %9 : vector<1x128xf32> to vector<8x128xf32>
    %11 = arith.addf %8, %10 : vector<8x128xf32>
    %12 = math.tanh %11 : vector<8x128xf32>
    %c0_10 = arith.constant 0 : index
    %c0_11 = arith.constant 0 : index
    %13 = vector.load %arg6[%c0_10, %c0_11] : memref<128x8xf32, #tpu.memory_space<vmem>>, vector<128x8xf32>
    %cst_12 = arith.constant dense<0.000000e+00> : vector<8x8xf32>
    %14 = tpu.matmul %12, %13, %cst_12 {dimension_numbers = #tpu.dot_dimension_numbers<[1], [0], [0], [1], [0, 0, 1, 1], [], []>} : vector<8x128xf32>, vector<128x8xf32>, vector<8x8xf32> -> vector<8x8xf32>
    %c0_13 = arith.constant 0 : index
    %c0_14 = arith.constant 0 : index
    %15 = vector.load %arg7[%c0_13, %c0_14] : memref<1x8xf32, #tpu.memory_space<vmem>>, vector<1x8xf32>
    %16 = vector.broadcast %15 : vector<1x8xf32> to vector<8x8xf32>
    %17 = arith.addf %14, %16 : vector<8x8xf32>
    %c0_15 = arith.constant 0 : index
    %c0_16 = arith.constant 0 : index
    %18 = vector.load %arg8[%c0_15, %c0_16] : memref<8x8xf32, #tpu.memory_space<vmem>>, vector<8x8xf32>
    tpu.vector_store %arg8[%c0_15, %c0_16], %17 {strides = array<i32>} : memref<8x8xf32, #tpu.memory_space<vmem>>, vector<8x8xf32>,
    return
  }
  func.func @transform_0(%arg0: i32) -> (i32, i32) {
    %c0_i32 = arith.constant 0 : i32
    %c0_i32_0 = arith.constant 0 : i32
    return %arg0, %c0_i32 : i32, i32
  }
  func.func @transform_1(%arg0: i32) -> (i32, i32) {
    %c0_i32 = arith.constant 0 : i32
    %c0_i32_0 = arith.constant 0 : i32
    %c0_i32_1 = arith.constant 0 : i32
    return %c0_i32, %c0_i32_0 : i32, i32
  }
  func.func @transform_2(%arg0: i32) -> (i32, i32) {
    %c0_i32 = arith.constant 0 : i32
    %c0_i32_0 = arith.constant 0 : i32
    %c0_i32_1 = arith.constant 0 : i32
    return %c0_i32, %c0_i32_0 : i32, i32
  }
  func.func @transform_3(%arg0: i32) -> (i32, i32) {
    %c0_i32 = arith.constant 0 : i32
    %c0_i32_0 = arith.constant 0 : i32
    %c0_i32_1 = arith.constant 0 : i32
    return %c0_i32, %c0_i32_0 : i32, i32
  }
  func.func @transform_4(%arg0: i32) -> (i32, i32) {
    %c0_i32 = arith.constant 0 : i32
    %c0_i32_0 = arith.constant 0 : i32
    %c0_i32_1 = arith.constant 0 : i32
    return %c0_i32, %c0_i32_0 : i32, i32
  }
  func.func @transform_5(%arg0: i32) -> (i32, i32) {
    %c0_i32 = arith.constant 0 : i32
    %c0_i32_0 = arith.constant 0 : i32
    %c0_i32_1 = arith.constant 0 : i32
    return %c0_i32, %c0_i32_0 : i32, i32
  }
  func.func @transform_6(%arg0: i32) -> (i32, i32) {
    %c0_i32 = arith.constant 0 : i32
    %c0_i32_0 = arith.constant 0 : i32
    %c0_i32_1 = arith.constant 0 : i32
    return %c0_i32, %c0_i32_0 : i32, i32
  }
  func.func @transform_7(%arg0: i32) -> (i32, i32) {
    %c0_i32 = arith.constant 0 : i32
    %c0_i32_0 = arith.constant 0 : i32
    return %arg0, %c0_i32 : i32, i32
  }
}

</mosaic_0001>

<bundles_post_ra>
// kernel: critic_forward.1
= control target key start
LH: loop header
LB: loop body
LE: loop exit
PB: predicated region body
PF: predicated region fallthrough
CT: control target
= control target key end

     0   :  { %12 = vsyncpa [#allocation3], 0  ;;  %s201_s27 = smov [#allocation2]   ;;  %s202_s29 = smov 128   ;;  %s358_s0 = inlined_call_operand.vmem [shape: f32[8,32], index: 0, kind: input, shape index: {}]   ;;  %s359_s1 = inlined_call_operand.hbm [shape: f32[32,128], index: 1, kind: input, shape index: {}]   ;;  %s360_s2 = inlined_call_operand.vmem [shape: f32[1,128], index: 2, kind: input, shape index: {}]   ;;  %s361_s3 = inlined_call_operand.vmem [shape: f32[128,128], index: 3, kind: input, shape index: {}]   ;;  %s362_s4 = inlined_call_operand.vmem [shape: f32[1,128], index: 4, kind: input, shape index: {}]   ;;  %s363_s5 = inlined_call_operand.vmem [shape: f32[128,8], index: 5, kind: input, shape index: {}]   ;;  %s364_s6 = inlined_call_operand.vmem [shape: f32[1,8], index: 6, kind: input, shape index: {}]   ;;  %s365_s7 = inlined_call_operand.vmem [shape: f32[8,8], index: 7, kind: output, shape index: {}]  }
   0x1   :  { %s19_s26 = sshll.u32 %s359_s1, 4  ;;  %s21_s28 = sshll.u32 %s201_s27, 4  ;;  %s20_s26 = int_to_ptr.hbm [resolvable:$true] %s19_s26  ;;  %s22_s28 = int_to_ptr.vmem [resolvable:$true] %s21_s28 }
   0x2   :  { %s203_s30 = smov 8  }
   0x3   :  { %27 = dma.hbm_to_vmem [thread:$0]  %s20_s26, 512, %s22_s28, [#allocation3], %s202_s29, %s202_s29, %s203_s30  }
   0x4   :  { %199 = dma.done.wait [#allocation3], 512  }
   0x5   :  { %200 = vsyncadd [#allocation3], 4294966784  ;;  %v46_v0 = vld [vmem:[#allocation2 + $0x18] sm:$0xff]  ;;  %v45_v1 = vld [vmem:[#allocation2 + $0x10] sm:$0xff]  ;;  %vm51_vm0 = vcmask 261120   ;;  %vm157_vm1 = vcmask 64512  }
   0x6   :  { %67 = vmatpush.msra.mxu0 %v46_v0  ;;  %v91_v2 = vld [vmem:[%s361_s3 + $0x78] sm:$0xff]  ;;  %v44_v3 = vld [vmem:[#allocation2 + $0x8] sm:$0xff]  ;;  %v90_v4 = vld [vmem:[%s361_s3 + $0x70] sm:$0xff] }
   0x7   :  { %96 = vmatpush.msra.mxu1 %v91_v2  ;;  %v89_v5 = vld [vmem:[%s361_s3 + $0x68] sm:$0xff]  ;;  %v43_v6 = vld [vmem:[#allocation2] sm:$0xff]  ;;  %v87_v9 = vld [vmem:[%s361_s3 + $0x58] sm:$0xff] }
   0x8   :  { %68 = vmatpush.msra.mxu0 %v45_v1  ;;  %v42_v7 = vld [vmem:[%s358_s0] sm:$0xff]  ;;  %v86_v10 = vld [vmem:[%s361_s3 + $0x50] sm:$0xff]  ;;  %v85_v11 = vld [vmem:[%s361_s3 + $0x48] sm:$0xff] }
   0x9   :  { %97 = vmatpush.msra.mxu1 %v90_v4  ;;  %v88_v8 = vld [vmem:[%s361_s3 + $0x60] sm:$0xff]  ;;  %v83_v13 = vld [vmem:[%s361_s3 + $0x38] sm:$0xff]  ;;  %v82_v14 = vld [vmem:[%s361_s3 + $0x30] sm:$0xff] }
   0xa   :  { %69 = vmatpush.msra.mxu0 %v44_v3  ;;  %v84_v12 = vld [vmem:[%s361_s3 + $0x40] sm:$0xff]  ;;  %v81_v15 = vld [vmem:[%s361_s3 + $0x28] sm:$0xff]  ;;  %v79_v17 = vld [vmem:[%s361_s3 + $0x18] sm:$0xff] }
   0xb   :  { %98 = vmatpush.msra.mxu1 %v89_v5  ;;  %v80_v16 = vld [vmem:[%s361_s3 + $0x20] sm:$0xff]  ;;  %v78_v18 = vld [vmem:[%s361_s3 + $0x10] sm:$0xff]  ;;  %v77_v19 = vld [vmem:[%s361_s3 + $0x8] sm:$0xff] }
   0xc   :  { %70 = vmatpush.msra.mxu0 %v43_v6  ;;  %v76_v20 = vld [vmem:[%s361_s3] sm:$0xff]  ;;  %v132_v21 = vld [vmem:[%s363_s5 + $0x78] sm:$0xff]  ;;  %v131_v22 = vld [vmem:[%s363_s5 + $0x70] sm:$0xff] }
   0xd   :  { %164 = vmatmul.msk.f32.vlgmr.msra.gmra.mxu0 %vm51_vm0, %v42_v7  ;;  %99 = vmatpush.msra.mxu1 %v88_v8  ;;  %v130_v23 = vld [vmem:[%s363_s5 + $0x68] sm:$0xff]  ;;  %v129_v24 = vld [vmem:[%s363_s5 + $0x60] sm:$0xff]  ;;  %v128_v25 = vld [vmem:[%s363_s5 + $0x58] sm:$0xff] }
   0xe   :  { %137 = vmatpush.msra.mxu2 %v132_v21  ;;  %v127_v26 = vld [vmem:[%s363_s5 + $0x50] sm:$0xff]  ;;  %v126_v27 = vld [vmem:[%s363_s5 + $0x48] sm:$0xff]  ;;  %v125_v28 = vld [vmem:[%s363_s5 + $0x40] sm:$0xff] }
   0xf   :  { %100 = vmatpush.msra.mxu1 %v87_v9  ;;  %v124_v29 = vld [vmem:[%s363_s5 + $0x38] sm:$0xff]  ;;  %v123_v30 = vld [vmem:[%s363_s5 + $0x30] sm:$0xff]  ;;  %v122_v31 = vld [vmem:[%s363_s5 + $0x28] sm:$0xff] }
  0x10   :  { %138 = vmatpush.msra.mxu2 %v131_v22  ;;  %v168_v32 = vld [vmem:[%s360_s2] ss:$0 sm:$0xff]  ;;  %v120_v37 = vld [vmem:[%s363_s5 + $0x18] sm:$0xff]  ;;  %v119_v38 = vld [vmem:[%s363_s5 + $0x10] sm:$0xff] }
  0x11   :  { %101 = vmatpush.msra.mxu1 %v86_v10  ;;  %v121_v36 = vld [vmem:[%s363_s5 + $0x20] sm:$0xff]  ;;  %v118_v39 = vld [vmem:[%s363_s5 + $0x8] sm:$0xff] }
  0x12   :  { %139 = vmatpush.msra.mxu2 %v130_v23  ;;  %v117_v40 = vld [vmem:[%s363_s5] sm:$0xff] }
  0x13   :  { %102 = vmatpush.msra.mxu1 %v85_v11  ;;  %v169_v41 = vld [vmem:[%s362_s4] ss:$0 sm:$0xff] }
  0x14   :  { %140 = vmatpush.msra.mxu2 %v129_v24  ;;  %v170_v45 = vld [vmem:[%s364_s6] ss:$0 sm:$0xff] }
  0x15   :  { %103 = vmatpush.msra.mxu1 %v84_v12 }
  0x16   :  { %141 = vmatpush.msra.mxu2 %v128_v25 }
  0x17   :  { %104 = vmatpush.msra.mxu1 %v83_v13 }
  0x18   :  { %142 = vmatpush.msra.mxu2 %v127_v26 }
  0x19   :  { %105 = vmatpush.msra.mxu1 %v82_v14 }
  0x1a   :  { %143 = vmatpush.msra.mxu2 %v126_v27 }
  0x1b   :  { %106 = vmatpush.msra.mxu1 %v81_v15 }
  0x1c   :  { %144 = vmatpush.msra.mxu2 %v125_v28 }
  0x1d   :  { %107 = vmatpush.msra.mxu1 %v80_v16 }
  0x1e   :  { %145 = vmatpush.msra.mxu2 %v124_v29 }
  0x1f   :  { %108 = vmatpush.msra.mxu1 %v79_v17 }
  0x20   :  { %146 = vmatpush.msra.mxu2 %v123_v30 }
  0x21   :  { %109 = vmatpush.msra.mxu1 %v78_v18 }
  0x22   :  { %147 = vmatpush.msra.mxu2 %v122_v31 }
  0x23   :  { %110 = vmatpush.msra.mxu1 %v77_v19 }
  0x24   :  { %148 = vmatpush.msra.mxu2 %v121_v36 }
  0x25   :  { %111 = vmatpush.msra.mxu1 %v76_v20 }
  0x26   :  { %149 = vmatpush.msra.mxu2 %v120_v37 }
  0x28   :  { %150 = vmatpush.msra.mxu2 %v119_v38 }
  0x2a   :  { %151 = vmatpush.msra.mxu2 %v118_v39 }
  0x2c   :  { %152 = vmatpush.msra.mxu2 %v117_v40 }
  0x8a   :  { %v72_v33 = vpop.f32.mrf.mxu0 }
  0x8b   :  { %v73_v34 = vadd.f32 %v168_v32, %v72_v33 }
  0x8d   :  { %171 = vtanh.f32 %v73_v34 }
  0x93   :  { %v172_v35 = vpop.eup %171 }
  0x94   :  { %112 = vmatmul.f32.vlgmr.msra.gmra.mxu1 %v172_v35 }
 0x111   :  { %v113_v42 = vpop.f32.mrf.mxu1 }
 0x112   :  { %v114_v43 = vadd.f32 %v169_v41, %v113_v42 }
 0x114   :  { %173 = vtanh.f32 %v114_v43 }
 0x11a   :  { %v174_v44 = vpop.eup %173 }
 0x11b   :  { %153 = vmatmul.f32.vlgmr.msra.gmra.mxu2 %v174_v44 }
 0x19e   :  { %v154_v46 = vpop.f32.mrf.mxu2 }
 0x19f   :  { %v155_v47 = vadd.f32 %v170_v45, %v154_v46 }
 0x1a1   :  { %158 = vst.msk [vmem:[%s365_s7] sm:$0xff] %vm157_vm1, %v155_v47 }
 0x1a2   :  { %163 = vsyncpa [#allocation3], 1 }

</bundles_post_ra>
